<compile_context>
chip_gen: v6e
topology: v6e:2x2x1
jax: 0.10.0
libtpu: 0.0.40
codegen_flags: <defaults>
</compile_context>

<pallas_src>
import jax
import jax.numpy as jnp
from jax import lax
from jax.experimental import pallas as pl
from jax.experimental.pallas import tpu as pltpu


def _round_up(x, m):
    return ((x + m - 1) // m) * m


# ----------------------------------------------------------------------------
# Fused kernel: counts-matmul gather/pool + Linear -> ReLU -> Linear
# ----------------------------------------------------------------------------
def _fused_kernel(ids_ref,      # VMEM (TB, L)     int32
                  table_ref,    # VMEM (Vpad, H)   weight dtype (renormed, zero-padded rows)
                  w1_ref,       # VMEM (H, H)      weight dtype (pre-scaled by 1/L)
                  b1_ref,       # VMEM (1, H)      f32
                  w2_ref,       # VMEM (H, Cpad)   weight dtype (lane-padded)
                  b2_ref,       # VMEM (1, Cpad)   f32
                  out_ref):     # VMEM (TB, Cpad)  f32
    TB, L = ids_ref.shape
    Vpad = table_ref.shape[0]
    wt_dtype = table_ref.dtype

    # Token-count matrix: counts[b, v] = sum_l (ids[b, l] == v).
    # L static compares on the VPU; iota hoisted out of the loop.
    ids = ids_ref[...]                                            # (TB, L)
    v_iota = lax.broadcasted_iota(jnp.int32, (TB, Vpad), 1)       # (TB, Vpad)
    counts = jnp.zeros((TB, Vpad), jnp.float32)
    for l in range(L):                                            # static, small L
        counts = counts + (v_iota == ids[:, l:l + 1]).astype(jnp.float32)

    # Sum-pool over L via one MXU matmul (mean's 1/L folded into w1).
    pooled = jnp.dot(counts.astype(wt_dtype), table_ref[...],
                     preferred_element_type=jnp.float32)          # (TB, H)

    # Linear -> ReLU -> Linear; elementwise stays f32, MXU inputs in wt_dtype.
    h = jnp.dot(pooled.astype(wt_dtype), w1_ref[...],
                preferred_element_type=jnp.float32) + b1_ref[...] # (TB, H)
    h = jnp.maximum(h, 0.0)
    out_ref[...] = (jnp.dot(h.astype(wt_dtype), w2_ref[...],
                            preferred_element_type=jnp.float32)
                    + b2_ref[...]).astype(out_ref.dtype)          # (TB, Cpad)


# ----------------------------------------------------------------------------
# Wrapper: replicates TorchModel.forward(x, y=None) -> logits (B, C)
# ----------------------------------------------------------------------------
def torch_model_forward(token_ids, embed_table, w1, b1, w2, b2,
                        *, weight_dtype=jnp.float32):
    B, L = token_ids.shape
    V, H = embed_table.shape
    C = w2.shape[1]

    # Tiered batch tile (sublane aligned, minimal padded compute).
    TB = 128
    for tier in (8, 16, 32, 64, 128):
        if B <= tier:
            TB = tier
            break
    Bp = _round_up(B, TB)
    Vpad = _round_up(V, 128)           # lane-dense K dim for counts @ table
    Cpad = _round_up(C, 128)           # lane-dense output (unmasked vst)

    # Renorm the table ONCE, vectorized over all V rows (torch renorm formula:
    # scale = max_norm / (norm + 1e-7) when norm > max_norm, here max_norm=1).
    tbl = embed_table.astype(jnp.float32)
    norms = jnp.sqrt(jnp.sum(tbl * tbl, axis=-1, keepdims=True))
    tbl = tbl * jnp.where(norms > 1.0, 1.0 / (norms + 1e-7), 1.0)
    tbl_p = jnp.zeros((Vpad, H), weight_dtype).at[:V, :].set(tbl.astype(weight_dtype))

    w1_s = (w1.astype(jnp.float32) * (1.0 / L)).astype(weight_dtype)   # fold mean 1/L
    b1_f = b1.astype(jnp.float32).reshape(1, H)
    w2_p = jnp.zeros((H, Cpad), weight_dtype).at[:, :C].set(w2.astype(weight_dtype))
    b2_p = jnp.zeros((1, Cpad), jnp.float32).at[:, :C].set(
        b2.astype(jnp.float32).reshape(1, C))

    ids_p = jnp.zeros((Bp, L), jnp.int32).at[:B].set(token_ids.astype(jnp.int32))

    # Explicit VMEM budget from actual block sizes (x2 for double-buffering).
    isz = jnp.dtype(weight_dtype).itemsize
    block_bytes = (TB * L * 4 + Vpad * H * isz + H * H * isz + H * 4
                   + H * Cpad * isz + Cpad * 4 + TB * Cpad * 4)
    vmem_limit = int(min(max(2 * block_bytes + (2 << 20), 4 << 20), 64 << 20))

    out = pl.pallas_call(
        _fused_kernel,
        out_shape=jax.ShapeDtypeStruct((Bp, Cpad), jnp.float32),
        grid_spec=pltpu.PrefetchScalarGridSpec(
            num_scalar_prefetch=0,
            grid=(Bp // TB,),
            in_specs=[
                pl.BlockSpec((TB, L), lambda i: (i, 0)),        # token ids (VMEM)
                pl.BlockSpec((Vpad, H), lambda i: (0, 0)),      # renormed table
                pl.BlockSpec((H, H), lambda i: (0, 0)),         # w1 / L
                pl.BlockSpec((1, H), lambda i: (0, 0)),         # b1
                pl.BlockSpec((H, Cpad), lambda i: (0, 0)),      # w2 (lane-padded)
                pl.BlockSpec((1, Cpad), lambda i: (0, 0)),      # b2 (lane-padded)
            ],
            out_specs=pl.BlockSpec((TB, Cpad), lambda i: (i, 0)),
        ),
        compiler_params=pltpu.CompilerParams(
            dimension_semantics=("parallel",),                  # megacore sharding
            vmem_limit_bytes=vmem_limit,
        ),
    )(ids_p, tbl_p, w1_s, b1_f, w2_p, b2_p)

    return out[:B, :C]


# ----------------------------------------------------------------------------
# Deterministic parameter construction + example run
# ----------------------------------------------------------------------------
def make_params(key, vocab_size, hidden_size, class_num):
    k_emb, k_w1, k_b1, k_w2, k_b2 = jax.random.split(key, 5)
    embed = jax.random.normal(k_emb, (vocab_size, hidden_size), jnp.float32)
    # Linear(hidden, hidden): stored transposed so kernel does x @ w1.
    w1 = jax.random.normal(k_w1, (hidden_size, hidden_size), jnp.float32) * 0.1
    b1 = jax.random.normal(k_b1, (1, hidden_size), jnp.float32) * 0.1
    # Linear(hidden, class_num)
    w2 = jax.random.normal(k_w2, (hidden_size, class_num), jnp.float32) * 0.1
    b2 = jax.random.normal(k_b2, (1, class_num), jnp.float32) * 0.1
    return embed, w1, b1, w2, b2


if __name__ == "__main__":
    cfg = dict(vocab_size=30, hidden_size=32, maxlength=8, class_num=4)
    batch = 2

    key = jax.random.PRNGKey(0)
    k_params, k_tokens = jax.random.split(key)
    embed, w1, b1, w2, b2 = make_params(
        k_params, cfg["vocab_size"], cfg["hidden_size"], cfg["class_num"])

    token_ids = jax.random.randint(
        k_tokens, (batch, cfg["maxlength"]), 0, cfg["vocab_size"], jnp.int32)

    logits = torch_model_forward(token_ids, embed, w1, b1, w2, b2,
                                 weight_dtype=jnp.float32)  # bf16 recommended on v6e/v7x
    jax.block_until_ready(logits)

    # Pure-JAX reference (same math, no Pallas): gather, per-row max_norm clip,
    # mean-pool, Linear -> ReLU -> Linear.
    emb = jnp.take(embed, token_ids, axis=0)                       # (B, L, H)
    norms = jnp.sqrt(jnp.sum(emb * emb, axis=-1, keepdims=True))
    emb = emb * jnp.where(norms > 1.0, 1.0 / (norms + 1e-7), 1.0)
    pooled = jnp.mean(emb, axis=1)                                 # (B, H)
    ref = jnp.maximum(pooled @ w1 + b1, 0.0) @ w2 + b2             # (B, C)

    if not jnp.allclose(logits, ref, atol=1e-4, rtol=1e-4):
        raise AssertionError(
            f"mismatch: max abs err = {jnp.max(jnp.abs(logits - ref))}")
    print("KERNEL_OK")
</pallas_src>

<mosaic_0001>
module attributes {stable_mosaic.version = 11 : i64} {
  func.func @_fused_kernel(%arg0: i32, %arg1: memref<8x8xi32, #tpu.memory_space<vmem>>, %arg2: memref<128x32xf32, #tpu.memory_space<vmem>>, %arg3: memref<32x32xf32, #tpu.memory_space<vmem>>, %arg4: memref<1x32xf32, #tpu.memory_space<vmem>>, %arg5: memref<32x128xf32, #tpu.memory_space<vmem>>, %arg6: memref<1x128xf32, #tpu.memory_space<vmem>>, %arg7: memref<8x128xf32, #tpu.memory_space<vmem>>) attributes {dimension_semantics = [#tpu.dimension_semantics<parallel>], iteration_bounds = array<i64: 1>, scalar_prefetch = 0 : i64, scratch_operands = 0 : i64, tpu.core_type = #tpu.core_type<tc>, window_params = [{transform_indices = @transform_0, window_bounds = array<i64: 8, 8>}, {pipeline_mode = #tpu.pipeline_mode<synchronous>, transform_indices = @transform_1, window_bounds = array<i64: 128, 32>}, {pipeline_mode = #tpu.pipeline_mode<synchronous>, transform_indices = @transform_2, window_bounds = array<i64: 32, 32>}, {pipeline_mode = #tpu.pipeline_mode<synchronous>, transform_indices = @transform_3, window_bounds = array<i64: 1, 32>}, {pipeline_mode = #tpu.pipeline_mode<synchronous>, transform_indices = @transform_4, window_bounds = array<i64: 32, 128>}, {pipeline_mode = #tpu.pipeline_mode<synchronous>, transform_indices = @transform_5, window_bounds = array<i64: 1, 128>}, {transform_indices = @transform_6, window_bounds = array<i64: 8, 128>}]} {
    %c0 = arith.constant 0 : index
    %c0_0 = arith.constant 0 : index
    %0 = vector.load %arg1[%c0, %c0_0] : memref<8x8xi32, #tpu.memory_space<vmem>>, vector<8x8xi32>
    %1 = tpu.iota {dimensions = array<i32: 1>} : vector<8x128xi32>
    %cst = arith.constant 0.000000e+00 : f32
    %2 = vector.broadcast %cst : f32 to vector<8x128xf32>
    %3 = vector.extract_strided_slice %0 {offsets = [0, 0], sizes = [8, 1], strides = [1, 1]} : vector<8x8xi32> to vector<8x1xi32>
    %4 = vector.broadcast %3 : vector<8x1xi32> to vector<8x128xi32>
    %5 = arith.cmpi eq, %1, %4 : vector<8x128xi32>
    %6 = arith.extui %5 : vector<8x128xi1> to vector<8x128xi32>
    %7 = arith.sitofp %6 : vector<8x128xi32> to vector<8x128xf32>
    %8 = arith.addf %2, %7 : vector<8x128xf32>
    %9 = vector.extract_strided_slice %0 {offsets = [0, 1], sizes = [8, 1], strides = [1, 1]} : vector<8x8xi32> to vector<8x1xi32>
    %10 = vector.broadcast %9 : vector<8x1xi32> to vector<8x128xi32>
    %11 = arith.cmpi eq, %1, %10 : vector<8x128xi32>
    %12 = arith.extui %11 : vector<8x128xi1> to vector<8x128xi32>
    %13 = arith.sitofp %12 : vector<8x128xi32> to vector<8x128xf32>
    %14 = arith.addf %8, %13 : vector<8x128xf32>
    %15 = vector.extract_strided_slice %0 {offsets = [0, 2], sizes = [8, 1], strides = [1, 1]} : vector<8x8xi32> to vector<8x1xi32>
    %16 = vector.broadcast %15 : vector<8x1xi32> to vector<8x128xi32>
    %17 = arith.cmpi eq, %1, %16 : vector<8x128xi32>
    %18 = arith.extui %17 : vector<8x128xi1> to vector<8x128xi32>
    %19 = arith.sitofp %18 : vector<8x128xi32> to vector<8x128xf32>
    %20 = arith.addf %14, %19 : vector<8x128xf32>
    %21 = vector.extract_strided_slice %0 {offsets = [0, 3], sizes = [8, 1], strides = [1, 1]} : vector<8x8xi32> to vector<8x1xi32>
    %22 = vector.broadcast %21 : vector<8x1xi32> to vector<8x128xi32>
    %23 = arith.cmpi eq, %1, %22 : vector<8x128xi32>
    %24 = arith.extui %23 : vector<8x128xi1> to vector<8x128xi32>
    %25 = arith.sitofp %24 : vector<8x128xi32> to vector<8x128xf32>
    %26 = arith.addf %20, %25 : vector<8x128xf32>
    %27 = vector.extract_strided_slice %0 {offsets = [0, 4], sizes = [8, 1], strides = [1, 1]} : vector<8x8xi32> to vector<8x1xi32>
    %28 = vector.broadcast %27 : vector<8x1xi32> to vector<8x128xi32>
    %29 = arith.cmpi eq, %1, %28 : vector<8x128xi32>
    %30 = arith.extui %29 : vector<8x128xi1> to vector<8x128xi32>
    %31 = arith.sitofp %30 : vector<8x128xi32> to vector<8x128xf32>
    %32 = arith.addf %26, %31 : vector<8x128xf32>
    %33 = vector.extract_strided_slice %0 {offsets = [0, 5], sizes = [8, 1], strides = [1, 1]} : vector<8x8xi32> to vector<8x1xi32>
    %34 = vector.broadcast %33 : vector<8x1xi32> to vector<8x128xi32>
    %35 = arith.cmpi eq, %1, %34 : vector<8x128xi32>
    %36 = arith.extui %35 : vector<8x128xi1> to vector<8x128xi32>
    %37 = arith.sitofp %36 : vector<8x128xi32> to vector<8x128xf32>
    %38 = arith.addf %32, %37 : vector<8x128xf32>
    %39 = vector.extract_strided_slice %0 {offsets = [0, 6], sizes = [8, 1], strides = [1, 1]} : vector<8x8xi32> to vector<8x1xi32>
    %40 = vector.broadcast %39 : vector<8x1xi32> to vector<8x128xi32>
    %41 = arith.cmpi eq, %1, %40 : vector<8x128xi32>
    %42 = arith.extui %41 : vector<8x128xi1> to vector<8x128xi32>
    %43 = arith.sitofp %42 : vector<8x128xi32> to vector<8x128xf32>
    %44 = arith.addf %38, %43 : vector<8x128xf32>
    %45 = vector.extract_strided_slice %0 {offsets = [0, 7], sizes = [8, 1], strides = [1, 1]} : vector<8x8xi32> to vector<8x1xi32>
    %46 = vector.broadcast %45 : vector<8x1xi32> to vector<8x128xi32>
    %47 = arith.cmpi eq, %1, %46 : vector<8x128xi32>
    %48 = arith.extui %47 : vector<8x128xi1> to vector<8x128xi32>
    %49 = arith.sitofp %48 : vector<8x128xi32> to vector<8x128xf32>
    %50 = arith.addf %44, %49 : vector<8x128xf32>
    %c0_1 = arith.constant 0 : index
    %c0_2 = arith.constant 0 : index
    %51 = vector.load %arg2[%c0_1, %c0_2] : memref<128x32xf32, #tpu.memory_space<vmem>>, vector<128x32xf32>
    %cst_3 = arith.constant dense<0.000000e+00> : vector<8x32xf32>
    %52 = tpu.matmul %50, %51, %cst_3 {dimension_numbers = #tpu.dot_dimension_numbers<[1], [0], [0], [1], [0, 0, 1, 1], [], []>} : vector<8x128xf32>, vector<128x32xf32>, vector<8x32xf32> -> vector<8x32xf32>
    %c0_4 = arith.constant 0 : index
    %c0_5 = arith.constant 0 : index
    %53 = vector.load %arg3[%c0_4, %c0_5] : memref<32x32xf32, #tpu.memory_space<vmem>>, vector<32x32xf32>
    %cst_6 = arith.constant dense<0.000000e+00> : vector<8x32xf32>
    %54 = tpu.matmul %52, %53, %cst_6 {dimension_numbers = #tpu.dot_dimension_numbers<[1], [0], [0], [1], [0, 0, 1, 1], [], []>} : vector<8x32xf32>, vector<32x32xf32>, vector<8x32xf32> -> vector<8x32xf32>
    %c0_7 = arith.constant 0 : index
    %c0_8 = arith.constant 0 : index
    %55 = vector.load %arg4[%c0_7, %c0_8] : memref<1x32xf32, #tpu.memory_space<vmem>>, vector<1x32xf32>
    %56 = vector.broadcast %55 : vector<1x32xf32> to vector<8x32xf32>
    %57 = arith.addf %54, %56 : vector<8x32xf32>
    %cst_9 = arith.constant 0.000000e+00 : f32
    %58 = vector.broadcast %cst_9 : f32 to vector<8x32xf32>
    %59 = arith.maximumf %57, %58 : vector<8x32xf32>
    %c0_10 = arith.constant 0 : index
    %c0_11 = arith.constant 0 : index
    %60 = vector.load %arg5[%c0_10, %c0_11] : memref<32x128xf32, #tpu.memory_space<vmem>>, vector<32x128xf32>
    %cst_12 = arith.constant dense<0.000000e+00> : vector<8x128xf32>
    %61 = tpu.matmul %59, %60, %cst_12 {dimension_numbers = #tpu.dot_dimension_numbers<[1], [0], [0], [1], [0, 0, 1, 1], [], []>} : vector<8x32xf32>, vector<32x128xf32>, vector<8x128xf32> -> vector<8x128xf32>
    %c0_13 = arith.constant 0 : index
    %c0_14 = arith.constant 0 : index
    %62 = vector.load %arg6[%c0_13, %c0_14] : memref<1x128xf32, #tpu.memory_space<vmem>>, vector<1x128xf32>
    %63 = vector.broadcast %62 : vector<1x128xf32> to vector<8x128xf32>
    %64 = arith.addf %61, %63 : vector<8x128xf32>
    %c0_15 = arith.constant 0 : index
    %c0_16 = arith.constant 0 : index
    %65 = vector.load %arg7[%c0_15, %c0_16] : memref<8x128xf32, #tpu.memory_space<vmem>>, vector<8x128xf32>
    tpu.vector_store %arg7[%c0_15, %c0_16], %64 {strides = array<i32>} : memref<8x128xf32, #tpu.memory_space<vmem>>, vector<8x128xf32>,
    return
  }
  func.func @transform_0(%arg0: i32) -> (i32, i32) {
    %c0_i32 = arith.constant 0 : i32
    %c0_i32_0 = arith.constant 0 : i32
    return %arg0, %c0_i32 : i32, i32
  }
  func.func @transform_1(%arg0: i32) -> (i32, i32) {
    %c0_i32 = arith.constant 0 : i32
    %c0_i32_0 = arith.constant 0 : i32
    %c0_i32_1 = arith.constant 0 : i32
    return %c0_i32, %c0_i32_0 : i32, i32
  }
  func.func @transform_2(%arg0: i32) -> (i32, i32) {
    %c0_i32 = arith.constant 0 : i32
    %c0_i32_0 = arith.constant 0 : i32
    %c0_i32_1 = arith.constant 0 : i32
    return %c0_i32, %c0_i32_0 : i32, i32
  }
  func.func @transform_3(%arg0: i32) -> (i32, i32) {
    %c0_i32 = arith.constant 0 : i32
    %c0_i32_0 = arith.constant 0 : i32
    %c0_i32_1 = arith.constant 0 : i32
    return %c0_i32, %c0_i32_0 : i32, i32
  }
  func.func @transform_4(%arg0: i32) -> (i32, i32) {
    %c0_i32 = arith.constant 0 : i32
    %c0_i32_0 = arith.constant 0 : i32
    %c0_i32_1 = arith.constant 0 : i32
    return %c0_i32, %c0_i32_0 : i32, i32
  }
  func.func @transform_5(%arg0: i32) -> (i32, i32) {
    %c0_i32 = arith.constant 0 : i32
    %c0_i32_0 = arith.constant 0 : i32
    %c0_i32_1 = arith.constant 0 : i32
    return %c0_i32, %c0_i32_0 : i32, i32
  }
  func.func @transform_6(%arg0: i32) -> (i32, i32) {
    %c0_i32 = arith.constant 0 : i32
    %c0_i32_0 = arith.constant 0 : i32
    return %arg0, %c0_i32 : i32, i32
  }
}

</mosaic_0001>

<bundles_post_ra>
// kernel: tpu_custom_call.1
= control target key start
LH: loop header
LB: loop body
LE: loop exit
PB: predicated region body
PF: predicated region fallthrough
CT: control target
= control target key end

     0   :  { %v492_v1 = vmov 2   ;;  %v493_v2 = vmov 0   ;;  %v494_v4 = vmov 0.0   ;;  %s662_s0 = inlined_call_operand.vmem [shape: s32[8,8], index: 0, kind: input, shape index: {}]   ;;  %s663_s1 = inlined_call_operand.vmem [shape: f32[128,32], index: 1, kind: input, shape index: {}]   ;;  %s664_s2 = inlined_call_operand.vmem [shape: f32[32,32], index: 2, kind: input, shape index: {}]   ;;  %s665_s3 = inlined_call_operand.vmem [shape: f32[1,32], index: 3, kind: input, shape index: {}]   ;;  %s666_s4 = inlined_call_operand.vmem [shape: f32[32,128], index: 4, kind: input, shape index: {}]   ;;  %s667_s5 = inlined_call_operand.vmem [shape: f32[1,128], index: 5, kind: input, shape index: {}]   ;;  %s668_s6 = inlined_call_operand.hbm [shape: f32[8,128], index: 6, kind: output, shape index: {}]  }
   0x1   :  { %v24_v0 = vld [vmem:[%s662_s0] sm:$0xff]  ;;  %463 = vset.pattern.permute.xlu1 %v492_v1  ;;  %461 = vset.pattern.permute.xlu0 %v493_v2  ;;  %v98_v3 = vld [vmem:[%s663_s1 + $0x78] sm:$0xff] }
   0x2   :  { %42 = vperm.xlu1 %463, %v24_v0   ;;  %28 = vperm.xlu0 %461, %v24_v0  }
   0x3   :  { %393 = vmatprep.subr.mxu0 %v494_v4  ;;  %428 = vmatprep.subr.mxu1 %v494_v4 }
   0x4   :  { %11 = vsyncpa [#allocation3], 0  ;;  %394 = vmatpush3.msra.mxu0 %v98_v3  ;;  %v97_v5 = vld [vmem:[%s663_s1 + $0x70] sm:$0xff]  ;;  %v495_v6 = vmov 3   ;;  %v496_v7 = vmov 1   ;;  %v96_v8 = vld [vmem:[%s663_s1 + $0x68] sm:$0xff]  ;;  %v25_v29 = vlaneseq }
   0x5   :  { %395 = vmatprep.subr.mxu0 %v494_v4  ;;  %v497_v9 = vmov 4   ;;  %v498_v10 = vmov 5   ;;  %v95_v11 = vld [vmem:[%s663_s1 + $0x60] sm:$0xff]  ;;  %v94_v12 = vld [vmem:[%s663_s1 + $0x58] sm:$0xff]  ;;  %v93_v13 = vld [vmem:[%s663_s1 + $0x50] sm:$0xff]  ;;  %v499_v14 = vmov 6  }
   0x6   :  { %464 = vset.pattern.permute.xlu1 %v495_v6  ;;  %462 = vset.pattern.permute.xlu0 %v496_v7  ;;  %v92_v15 = vld [vmem:[%s663_s1 + $0x48] sm:$0xff]  ;;  %v500_v16 = vmov 7   ;;  %v91_v17 = vld [vmem:[%s663_s1 + $0x40] sm:$0xff]  ;;  %v90_v18 = vld [vmem:[%s663_s1 + $0x38] sm:$0xff]  ;;  %vm501_vm0 = vmmov 0   ;;  %v26_v32 = vand.u32 127, %v25_v29 }
   0x7   :  { %49 = vperm.xlu1 %464, %v24_v0   ;;  %35 = vperm.xlu0 %462, %v24_v0   ;;  %v172_v19 = vld [vmem:[%s664_s2 + $0x18] sm:$0xff]  ;;  %v89_v20 = vld [vmem:[%s663_s1 + $0x30] sm:$0xff]  ;;  %v88_v22 = vld [vmem:[%s663_s1 + $0x28] sm:$0xff]  ;;  %vm180_vm9 = vcmask 261120   ;;  %s502_s23 = smov [#allocation2]  }
   0x8   :  { %396 = vmatpush3.msra.mxu0 %v97_v5  ;;  %425 = vmatprep.mubr.msk.f32.mxu0 %vm501_vm0, %v494_v4  ;;  %v171_v21 = vld [vmem:[%s664_s2 + $0x10] sm:$0xff]  ;;  %v170_v23 = vld [vmem:[%s664_s2 + $0x8] sm:$0xff]  ;;  %v87_v24 = vld [vmem:[%s663_s1 + $0x20] sm:$0xff]  ;;  %s346_s24 = sshll.u32 %s502_s23, 4  ;;  %s347_s24 = int_to_ptr.vmem [resolvable:$true] %s346_s24 }
   0x9   :  { %397 = vmatprep.subr.mxu0 %v494_v4  ;;  %429 = vmatpush3.msra.mxu1 %v172_v19  ;;  %v86_v25 = vld [vmem:[%s663_s1 + $0x18] sm:$0xff]  ;;  %v85_v26 = vld [vmem:[%s663_s1 + $0x10] sm:$0xff]  ;;  %v84_v27 = vld [vmem:[%s663_s1 + $0x8] sm:$0xff]  ;;  %p475_p1 = scmp.lt.s32.totalorder %s347_s24, %s347_s24 }
   0xa   :  { %398 = vmatpush3.msra.mxu0 %v96_v8  ;;  %430 = vmatprep.subr.mxu1 %v494_v4  ;;  %v83_v28 = vld [vmem:[%s663_s1] sm:$0xff]  ;;  %v258_v55 = vld [vmem:[%s666_s4 + $0x18] sm:$0xff]  ;;  %v257_v58 = vld [vmem:[%s666_s4 + $0x10] sm:$0xff] }
   0xb   :  { %465 = vset.pattern.permute.xlu1 %v497_v9  ;;  %466 = vset.pattern.permute.xlu0 %v498_v10  ;;  %v169_v54 = vld [vmem:[%s664_s2] sm:$0xff]  ;;  %v256_v59 = vld [vmem:[%s666_s4 + $0x8] sm:$0xff] }
   0xc   :  { %56 = vperm.xlu1 %465, %v24_v0   ;;  %63 = vperm.xlu0 %466, %v24_v0   ;;  %v255_v60 = vld [vmem:[%s666_s4] sm:$0xff]  ;;  %s470_s4 = scalar_lea.vmem %s347_s24, 128 }
   0xd   :  { %399 = vmatprep.subr.mxu0 %v494_v4  ;;  %431 = vmatpush3.msra.mxu1 %v171_v21  ;;  %v362_v61 = vld [vmem:[%s665_s3] ss:$0 sm:$0xff]  ;;  %p471_p0 = scmp.ne.s32.totalorder %s347_s24, %s470_s4  ;;  %p476_p2 = scmp.lt.s32.totalorder %s470_s4, %s470_s4 }
   0xe   :  { %400 = vmatpush3.msra.mxu0 %v95_v11  ;;  %432 = vmatprep.subr.mxu1 %v494_v4  ;;  %v364_v2 = vld [vmem:[%s667_s5] ss:$0 sm:$0xff] }
   0xf   :  { %401 = vmatprep.subr.mxu0 %v494_v4  ;;  %433 = vmatpush3.msra.mxu1 %v170_v23  ;;  %p477_p3 = por %p476_p2, %p475_p1 }
  0x10   :  { %467 = vset.pattern.permute.xlu1 %v499_v14  ;;  %402 = vmatpush3.msra.mxu0 %v94_v12 }
  0x11   :  { %70 = vperm.xlu1 %467, %v24_v0   ;;  %403 = vmatprep.subr.mxu0 %v494_v4  ;;  %p478_p4 = pnand %p477_p3, %p471_p0 }
  0x12   :  { %404 = vmatpush3.msra.mxu0 %v93_v13  ;;  %469 = vset.pattern.permute.xlu0 %v500_v16 }
  0x13   :  { %405 = vmatprep.subr.mxu0 %v494_v4  ;;  %434 = vmatprep.subr.mxu1 %v494_v4 }
  0x14   :  { %406 = vmatpush3.msra.mxu0 %v92_v15  ;;  %436 = vmatprep.mubr.msk.f32.mxu1 %vm501_vm0, %v494_v4 }
  0x15   :  { %468 = vset.pattern.permute.xlu1 %v500_v16  ;;  %407 = vmatprep.subr.mxu0 %v494_v4 }
  0x16   :  { %77 = vperm.xlu1 %468, %v24_v0   ;;  %408 = vmatpush3.msra.mxu0 %v91_v17 }
  0x17   :  { %409 = vmatprep.subr.mxu0 %v494_v4  ;;  %435 = vmatpush3.msra.mxu1 %v169_v54 }
  0x18   :  { %410 = vmatpush3.msra.mxu0 %v90_v18  ;;  %439 = vmatprep.subr.mxu1 %v494_v4 }
  0x19   :  { %411 = vmatprep.subr.mxu0 %v494_v4 }
  0x1a   :  { %412 = vmatpush3.msra.mxu0 %v89_v20 }
  0x1b   :  { %413 = vmatprep.subr.mxu0 %v494_v4 }
  0x1c   :  { %414 = vmatpush3.msra.mxu0 %v88_v22 }
  0x1d   :  { %415 = vmatprep.subr.mxu0 %v494_v4 }
  0x1e   :  { %416 = vmatpush3.msra.mxu0 %v87_v24 }
  0x1f   :  { %417 = vmatprep.subr.mxu0 %v494_v4 }
  0x20   :  { %418 = vmatpush3.msra.mxu0 %v86_v25 }
  0x21   :  { %419 = vmatprep.subr.mxu0 %v494_v4 }
  0x22   :  { %420 = vmatpush3.msra.mxu0 %v85_v26 }
  0x23   :  { %421 = vmatprep.subr.mxu0 %v494_v4 }
  0x24   :  { %422 = vmatpush3.msra.mxu0 %v84_v27 }
  0x25   :  { %423 = vmatprep.subr.mxu0 %v494_v4 }
  0x26   :  { %424 = vmatpush3.msra.mxu0 %v83_v28 }
  0x7d   :  { %v43_v30 = vpop.permute.xlu1 %42  ;;  %v29_v31 = vpop.permute.xlu0 %28 }
  0x7e   :  { %vm30_vm1 = vcmp.eq.s32.totalorder %v26_v32, %v29_v31  ;;  %vm44_vm2 = vcmp.eq.s32.totalorder %v26_v32, %v43_v30 }
  0x7f   :  { %v354_v35 = vsel %vm30_vm1, 1.0, %v494_v4  ;;  %v356_v38 = vsel %vm44_vm2, 1.0, %v494_v4 }
  0x82   :  { %v50_v33 = vpop.permute.xlu1 %49  ;;  %v36_v34 = vpop.permute.xlu0 %35 }
  0x83   :  { %vm37_vm3 = vcmp.eq.s32.totalorder %v26_v32, %v36_v34  ;;  %vm51_vm4 = vcmp.eq.s32.totalorder %v26_v32, %v50_v33 }
  0x84   :  { %v355_v36 = vsel %vm37_vm3, 1.0, %v494_v4  ;;  %v357_v42 = vsel %vm51_vm4, 1.0, %v494_v4 }
  0x85   :  { %v40_v37 = vadd.f32 %v355_v36, %v354_v35 }
  0x87   :  { %v47_v39 = vadd.f32 %v356_v38, %v40_v37  ;;  %v57_v40 = vpop.permute.xlu1 %56  ;;  %v64_v41 = vpop.permute.xlu0 %63 }
  0x88   :  { %vm58_vm5 = vcmp.eq.s32.totalorder %v26_v32, %v57_v40  ;;  %vm65_vm6 = vcmp.eq.s32.totalorder %v26_v32, %v64_v41 }
  0x89   :  { %v54_v43 = vadd.f32 %v357_v42, %v47_v39  ;;  %v358_v44 = vsel %vm58_vm5, 1.0, %v494_v4  ;;  %v359_v46 = vsel %vm65_vm6, 1.0, %v494_v4 }
  0x8b   :  { %v61_v45 = vadd.f32 %v358_v44, %v54_v43 }
  0x8c   :  { %v71_v47 = vpop.permute.xlu1 %70 }
  0x8d   :  { %vm72_vm7 = vcmp.eq.s32.totalorder %v26_v32, %v71_v47  ;;  %v68_v48 = vadd.f32 %v359_v46, %v61_v45 }
  0x8e   :  { %v360_v49 = vsel %vm72_vm7, 1.0, %v494_v4 }
  0x8f   :  { %v75_v51 = vadd.f32 %v360_v49, %v68_v48 }
  0x91   :  { %v78_v50 = vpop.permute.xlu1 %77 }
  0x92   :  { %vm79_vm8 = vcmp.eq.s32.totalorder %v26_v32, %v78_v50 }
  0x93   :  { %v361_v52 = vsel %vm79_vm8, 1.0, %v494_v4 }
  0x94   :  { %v82_v53 = vadd.f32 %v361_v52, %v75_v51 }
  0x96   :  { %426 = vmatmul.mubr.f32.vlgmr.msra.gmra.mxu0 %v82_v53 }
 0x156   :  { %v165_v56 = vpop.f32.mrf.mxu0 }
 0x157   :  { %437 = vmatmul.mubr.msk.f32.vlgmr.msra.gmra.mxu1 %vm180_vm9, %v165_v56 }
 0x158   :  { %v427_v57 = vpop.f32.mrf.mxu0  ;;  %440 = vmatpush3.msra.mxu1 %v258_v55  ;;  %447 = vmatprep.mubr.msk.f32.mxu1 %vm501_vm0, %v494_v4 }
 0x159   :  { %441 = vmatprep.subr.mxu1 %v494_v4 }
 0x15a   :  { %442 = vmatpush3.msra.mxu1 %v257_v58 }
 0x15b   :  { %443 = vmatprep.subr.mxu1 %v494_v4 }
 0x15c   :  { %444 = vmatpush3.msra.mxu1 %v256_v59 }
 0x15d   :  { %445 = vmatprep.subr.mxu1 %v494_v4 }
 0x15e   :  { %446 = vmatpush3.msra.mxu1 %v255_v60 }
 0x217   :  { %v250_v62 = vpop.f32.mrf.mxu1 }
 0x218   :  { %v251_v63 = vadd.f32 %v362_v61, %v250_v62 }
 0x219   :  { %v438_v0 = vpop.f32.mrf.mxu1 }
 0x21a   :  { %v254_v1 = vmax.f32 %v251_v63, 0.0 }
 0x21c   :  { %448 = vmatmul.mubr.msk.f32.vlgmr.msra.gmra.mxu1 %vm180_vm9, %v254_v1 }
 0x2dc   :  { %v335_v3 = vpop.f32.mrf.mxu1 }
 0x2dd   :  { %v336_v4 = vadd.f32 %v364_v2, %v335_v3 }
 0x2de   :  { %v449_v5 = vpop.f32.mrf.mxu1 }
 0x2df   :  { %339 = vst [vmem:[#allocation2] sm:$0xff] %v336_v4 }
 0x2e0   :  { %481 = shalt.err (!%p478_p4)
}
 0x2e1   :  { %349 = dma.vmem_to_hbm [thread:$0]  %s347_s24, 128, %s668_s6, [#allocation3]  }
 0x2e2   :  { %490 = dma.done.wait [#allocation3], 128  }
 0x2e3   :  { %491 = vsyncadd [#allocation3], 4294967168 }
 0x2e4   :  { %353 = vsyncpa [#allocation3], 1 }

</bundles_post_ra>
